<compile_context>
chip_gen: v5e
topology: v5e:2x2
jax: 0.10.0
libtpu: 0.0.40
codegen_flags: <defaults>
</compile_context>

<pallas_src>
import jax
import jax.numpy as jnp
from jax.experimental import pallas as pl
from jax.experimental.pallas import tpu as pltpu

_VMEM_LIMIT = 48 * 1024 * 1024   # <= safe scoped budget on v7x (64 MiB physical);
                                 # plenty of headroom on v5e/v6e (128 MiB physical)


def _round_up(a, b):
    return ((a + b - 1) // b) * b


def _pick_batch_tile(n_real, max_rows=2048):
    """VMEM-budget-driven batch tile + padded batch size.

    At 2048 rows the double-buffered bf16 patch block is ~3.4 MiB and all f32
    intermediates stay under ~8 MiB, well inside the scoped-VMEM limit on every
    generation (including v7x).  Small batches round up to the sublane multiple
    of 8 (single full-array block); large batches pad to a multiple of the tile.
    """
    tn = min(max_rows, _round_up(max(n_real, 1), 8))
    n_pad = _round_up(n_real, tn)
    return tn, n_pad


# --------------------------------------------------------------------------- #
# Pass 1: conv1 (bf16 matmul) + full-batch BN sum / sum-of-squares accumulation.
# --------------------------------------------------------------------------- #
def stats_kernel(p1_ref, w1_ref, y1_ref, sum_ref, sq_ref):
    # p1_ref : (TN, 432) bf16   conv1 im2col patches for one batch tile
    # w1_ref : (432, 128) bf16  block-diagonal conv1 weight (one (27,8) block/pos)
    # y1_ref : (TN, 128) bf16   cached conv1 output (consumed by pass 2)
    # sum_ref, sq_ref : (1, 128) f32 accumulator OUTPUTS (pinned block => resident)
    i = pl.program_id(0)

    @pl.when(i == 0)
    def _init():
        sum_ref[...] = jnp.zeros_like(sum_ref)
        sq_ref[...] = jnp.zeros_like(sq_ref)

    y1 = jnp.dot(p1_ref[...], w1_ref[...], preferred_element_type=jnp.float32)
    y1_ref[...] = y1.astype(y1_ref.dtype)
    sum_ref[...] += jnp.sum(y1, axis=0, keepdims=True)
    sq_ref[...] += jnp.sum(y1 * y1, axis=0, keepdims=True)


# --------------------------------------------------------------------------- #
# Pass 2: bn + relu, then conv2 ∘ avgpool ∘ flatten ∘ linear folded to ONE matmul.
# --------------------------------------------------------------------------- #
def forward_kernel(y1_ref, scale_ref, shift_ref, wh_ref, bh_ref, out_ref):
    act = jnp.maximum(
        y1_ref[...].astype(jnp.float32) * scale_ref[...] + shift_ref[...], 0.0)
    out_ref[...] = jnp.dot(act, wh_ref[...],
                           preferred_element_type=jnp.float32) + bh_ref[...]


def testnet_forward(x_nchw, p):
    n = x_nchw.shape[0]
    f32 = jnp.float32
    bf16 = jnp.bfloat16

    tn, n_pad = _pick_batch_tile(n)
    nb = n_pad // tn
    batch_map = lambda i: (i, 0)
    const_map = lambda i: (0, 0)

    # ---- glue: im2col for conv1 (3x3, stride 2, pad 1, 8x8 -> 4x4) ----------
    xpad = jnp.pad(x_nchw, ((0, 0), (0, 0), (1, 1), (1, 1)))        # (N,3,10,10)
    xh = jnp.transpose(xpad, (0, 2, 3, 1))                          # (N,10,10,3)
    taps = [xh[:, kh:kh + 8:2, kw:kw + 8:2, :]
            for kh in range(3) for kw in range(3)]                  # 9 x (N,4,4,3)
    pat = jnp.stack(taps, axis=3)                                   # (N,4,4,9,3)
    p1 = pat.reshape(n, 16 * 27)
    # Zero rows contribute exactly 0 to the BN sums (conv1 bias dropped below).
    p1 = jnp.pad(p1, ((0, n_pad - n), (0, 0))).astype(bf16)         # (Npad, 432)

    # ---- glue: block-diagonal conv1 weight (no bias: train-mode BN cancels it)
    w1_2d = jnp.transpose(p['conv1_w'], (2, 3, 1, 0)).reshape(27, 8)  # (kh,kw,ci)->co
    w1_bd = jnp.kron(jnp.eye(16, dtype=f32), w1_2d).astype(bf16)      # (432, 128)

    # ---- pass 1: conv1 + BN statistics --------------------------------------
    y1, s1, s2 = pl.pallas_call(
        stats_kernel,
        out_shape=(jax.ShapeDtypeStruct((n_pad, 128), bf16),
                   jax.ShapeDtypeStruct((1, 128), f32),
                   jax.ShapeDtypeStruct((1, 128), f32)),
        grid=(nb,),
        in_specs=[pl.BlockSpec((tn, 432), batch_map),
                  pl.BlockSpec((432, 128), const_map)],
        out_specs=(pl.BlockSpec((tn, 128), batch_map),
                   pl.BlockSpec((1, 128), const_map),
                   pl.BlockSpec((1, 128), const_map)),
        compiler_params=pltpu.CompilerParams(
            # Sequential cross-tile BN reduction (correctness requirement).
            # TODO(synk): on v7x, per-core partial sums combined in XLA would
            # let this axis be "parallel" across the 2 TensorCores.
            dimension_semantics=("arbitrary",),
            vmem_limit_bytes=_VMEM_LIMIT,
        ),
    )(p1, w1_bd)

    # ---- BN finalization: 128-element work, done once in plain JAX ----------
    inv_count = 1.0 / float(16 * n)                      # N_real samples only
    ch_sum = jnp.sum(s1.reshape(16, 8), axis=0)          # per-channel sums
    ch_sq = jnp.sum(s2.reshape(16, 8), axis=0)
    mean = ch_sum * inv_count
    var = jnp.maximum(ch_sq * inv_count - mean * mean, 0.0)   # clamp cancellation
    scale_c = p['bn_g'] * jax.lax.rsqrt(var + 1e-5)
    shift_c = p['bn_b'] - mean * scale_c
    scale_bc = jnp.tile(scale_c, 16).reshape(1, 128).astype(f32)
    shift_bc = jnp.tile(shift_c, 16).reshape(1, 128).astype(f32)

    # ---- glue: conv2 (3x3,s2,p1 on 4x4 -> 2x2) ∘ AvgPool2d(2,1) ∘ Linear -----
    # No nonlinearity after the ReLU, so the whole tail is one affine map:
    #   out = 0.25 * act @ (w2_big @ lin_w.T) + (conv2_b @ lin_w.T + lin_b)
    w2_big = jnp.zeros((128, 16), f32)
    for oh in range(2):
        for ow in range(2):
            for kh in range(3):
                for kw in range(3):
                    ih, iw = 2 * oh + kh - 1, 2 * ow + kw - 1
                    if 0 <= ih < 4 and 0 <= iw < 4:
                        pos = ih * 4 + iw
                        w2_big = w2_big.at[8 * pos:8 * (pos + 1), :].add(
                            p['conv2_w'][:, :, kh, kw].T)
    w3 = p['lin_w'].T                                               # (16, 2)
    w_head = 0.25 * (w2_big @ w3)                                   # (128, 2)
    b_head = p['conv2_b'].reshape(1, 16) @ w3 + p['lin_b'].reshape(1, 2)

    # ---- pass 2: bn + relu + fused head ("parallel" batch axis) -------------
    out_pad = pl.pallas_call(
        forward_kernel,
        out_shape=jax.ShapeDtypeStruct((n_pad, 2), f32),
        grid=(nb,),
        in_specs=[pl.BlockSpec((tn, 128), batch_map),
                  pl.BlockSpec((1, 128), const_map),
                  pl.BlockSpec((1, 128), const_map),
                  pl.BlockSpec((128, 2), const_map),
                  pl.BlockSpec((1, 2), const_map)],
        out_specs=pl.BlockSpec((tn, 2), batch_map),
        compiler_params=pltpu.CompilerParams(
            dimension_semantics=("parallel",),
            vmem_limit_bytes=_VMEM_LIMIT,
        ),
    )(y1, scale_bc, shift_bc, w_head, b_head)

    return out_pad[:n]


def ref_forward(x, p):
    """Pure-JAX f32 reference matching PyTorch TestNet.forward (train-mode BN)."""
    y = jax.lax.conv_general_dilated(
        x, p['conv1_w'], window_strides=(2, 2), padding=((1, 1), (1, 1)),
        dimension_numbers=('NCHW', 'OIHW', 'NCHW'))
    y = y + p['conv1_b'][None, :, None, None]
    mean = jnp.mean(y, axis=(0, 2, 3), keepdims=True)
    var = jnp.mean((y - mean) ** 2, axis=(0, 2, 3), keepdims=True)
    y = (y - mean) * jax.lax.rsqrt(var + 1e-5)
    y = y * p['bn_g'][None, :, None, None] + p['bn_b'][None, :, None, None]
    y = jnp.maximum(y, 0.0)
    y = jax.lax.conv_general_dilated(
        y, p['conv2_w'], window_strides=(2, 2), padding=((1, 1), (1, 1)),
        dimension_numbers=('NCHW', 'OIHW', 'NCHW'))
    y = y + p['conv2_b'][None, :, None, None]
    y = jnp.mean(y, axis=(2, 3))          # AvgPool2d(2,1) on 2x2 -> 1x1, flatten
    return y @ p['lin_w'].T + p['lin_b'][None, :]


if __name__ == "__main__":
    key = jax.random.PRNGKey(0)
    kx, k1, k2, k3, k4, k5, k6 = jax.random.split(key, 7)

    # Deterministic synthetic parameters (shapes from TestNet.__init__).
    params = {
        'conv1_w': jax.random.normal(k1, (8, 3, 3, 3), jnp.float32) * 0.2,    # OIHW
        'conv1_b': jax.random.normal(k2, (8,), jnp.float32) * 0.1,
        'bn_g':    jnp.ones((8,), jnp.float32),
        'bn_b':    jnp.zeros((8,), jnp.float32),
        'conv2_w': jax.random.normal(k3, (16, 8, 3, 3), jnp.float32) * 0.2,   # OIHW
        'conv2_b': jax.random.normal(k4, (16,), jnp.float32) * 0.1,
        'lin_w':   jax.random.normal(k5, (2, 16), jnp.float32) * 0.2,         # (out, in)
        'lin_b':   jax.random.normal(k6, (2,), jnp.float32) * 0.1,
    }

    # Input: NCHW, batch=2, 3 channels, 8x8 spatial (8 -> 4 -> 2 -> 1 after pool,
    # so flatten yields 16 features as Linear(16, 2) requires).
    x = jax.random.normal(kx, (2, 3, 8, 8), jnp.float32)

    out = testnet_forward(x, params)
    jax.block_until_ready(out)

    ref = ref_forward(x, params)
    assert out.shape == (2, 2)
    # Tolerance loosened vs the pure-f32 path: conv1 operands and the cached y1
    # are streamed in bf16 (f32 accumulation), giving ~1e-2-level deviation.
    assert jnp.allclose(out, ref, atol=5e-2, rtol=5e-2), (out, ref)
    print("KERNEL_OK")
</pallas_src>

<mosaic_0001>
module attributes {stable_mosaic.version = 11 : i64} {
  func.func @stats_kernel(%arg0: i32, %arg1: memref<8x432xbf16, #tpu.memory_space<vmem>>, %arg2: memref<432x128xbf16, #tpu.memory_space<vmem>>, %arg3: memref<8x128xbf16, #tpu.memory_space<vmem>>, %arg4: memref<1x128xf32, #tpu.memory_space<vmem>>, %arg5: memref<1x128xf32, #tpu.memory_space<vmem>>) attributes {dimension_semantics = [#tpu.dimension_semantics<arbitrary>], iteration_bounds = array<i64: 1>, scalar_prefetch = 0 : i64, scratch_operands = 0 : i64, tpu.core_type = #tpu.core_type<tc>, window_params = [{transform_indices = @transform_0, window_bounds = array<i64: 8, 432>}, {pipeline_mode = #tpu.pipeline_mode<synchronous>, transform_indices = @transform_1, window_bounds = array<i64: 432, 128>}, {transform_indices = @transform_2, window_bounds = array<i64: 8, 128>}, {pipeline_mode = #tpu.pipeline_mode<synchronous>, transform_indices = @transform_3, window_bounds = array<i64: 1, 128>}, {pipeline_mode = #tpu.pipeline_mode<synchronous>, transform_indices = @transform_4, window_bounds = array<i64: 1, 128>}]} {
    %c0_i32 = arith.constant 0 : i32
    %0 = arith.cmpi eq, %arg0, %c0_i32 : i32
    %1 = arith.extui %0 : i1 to i32
    %c0_i32_0 = arith.constant 0 : i32
    %2 = arith.cmpi ne, %1, %c0_i32_0 : i32
    scf.if %2 {
      %cst_16 = arith.constant 0.000000e+00 : f32
      %19 = vector.broadcast %cst_16 : f32 to vector<1x128xf32>
      %c0_17 = arith.constant 0 : index
      %c0_18 = arith.constant 0 : index
      %20 = vector.load %arg4[%c0_17, %c0_18] : memref<1x128xf32, #tpu.memory_space<vmem>>, vector<1x128xf32>
      tpu.vector_store %arg4[%c0_17, %c0_18], %19 {strides = array<i32>} : memref<1x128xf32, #tpu.memory_space<vmem>>, vector<1x128xf32>,
      %cst_19 = arith.constant 0.000000e+00 : f32
      %21 = vector.broadcast %cst_19 : f32 to vector<1x128xf32>
      %c0_20 = arith.constant 0 : index
      %c0_21 = arith.constant 0 : index
      %22 = vector.load %arg5[%c0_20, %c0_21] : memref<1x128xf32, #tpu.memory_space<vmem>>, vector<1x128xf32>
      tpu.vector_store %arg5[%c0_20, %c0_21], %21 {strides = array<i32>} : memref<1x128xf32, #tpu.memory_space<vmem>>, vector<1x128xf32>,
    } else {
    }
    %c0 = arith.constant 0 : index
    %c0_1 = arith.constant 0 : index
    %3 = vector.load %arg1[%c0, %c0_1] : memref<8x432xbf16, #tpu.memory_space<vmem>>, vector<8x432xbf16>
    %c0_2 = arith.constant 0 : index
    %c0_3 = arith.constant 0 : index
    %4 = vector.load %arg2[%c0_2, %c0_3] : memref<432x128xbf16, #tpu.memory_space<vmem>>, vector<432x128xbf16>
    %cst = arith.constant dense<0.000000e+00> : vector<8x128xf32>
    %5 = tpu.matmul %3, %4, %cst {dimension_numbers = #tpu.dot_dimension_numbers<[1], [0], [0], [1], [0, 0, 1, 1], [], []>} : vector<8x432xbf16>, vector<432x128xbf16>, vector<8x128xf32> -> vector<8x128xf32>
    %6 = arith.truncf %5 : vector<8x128xf32> to vector<8x128xbf16>
    %c0_4 = arith.constant 0 : index
    %c0_5 = arith.constant 0 : index
    %7 = vector.load %arg3[%c0_4, %c0_5] : memref<8x128xbf16, #tpu.memory_space<vmem>>, vector<8x128xbf16>
    tpu.vector_store %arg3[%c0_4, %c0_5], %6 {strides = array<i32>} : memref<8x128xbf16, #tpu.memory_space<vmem>>, vector<8x128xbf16>,
    %c0_6 = arith.constant 0 : index
    %c0_7 = arith.constant 0 : index
    %8 = vector.load %arg4[%c0_6, %c0_7] : memref<1x128xf32, #tpu.memory_space<vmem>>, vector<1x128xf32>
    %cst_8 = arith.constant dense<0.000000e+00> : vector<128xf32>
    %9 = vector.multi_reduction <add>, %5, %cst_8 [0] : vector<8x128xf32> to vector<128xf32>
    %10 = vector.shape_cast %9 : vector<128xf32> to vector<1x128xf32>
    %11 = arith.addf %8, %10 : vector<1x128xf32>
    %c0_9 = arith.constant 0 : index
    %c0_10 = arith.constant 0 : index
    %12 = vector.load %arg4[%c0_9, %c0_10] : memref<1x128xf32, #tpu.memory_space<vmem>>, vector<1x128xf32>
    tpu.vector_store %arg4[%c0_9, %c0_10], %11 {strides = array<i32>} : memref<1x128xf32, #tpu.memory_space<vmem>>, vector<1x128xf32>,
    %c0_11 = arith.constant 0 : index
    %c0_12 = arith.constant 0 : index
    %13 = vector.load %arg5[%c0_11, %c0_12] : memref<1x128xf32, #tpu.memory_space<vmem>>, vector<1x128xf32>
    %14 = arith.mulf %5, %5 : vector<8x128xf32>
    %cst_13 = arith.constant dense<0.000000e+00> : vector<128xf32>
    %15 = vector.multi_reduction <add>, %14, %cst_13 [0] : vector<8x128xf32> to vector<128xf32>
    %16 = vector.shape_cast %15 : vector<128xf32> to vector<1x128xf32>
    %17 = arith.addf %13, %16 : vector<1x128xf32>
    %c0_14 = arith.constant 0 : index
    %c0_15 = arith.constant 0 : index
    %18 = vector.load %arg5[%c0_14, %c0_15] : memref<1x128xf32, #tpu.memory_space<vmem>>, vector<1x128xf32>
    tpu.vector_store %arg5[%c0_14, %c0_15], %17 {strides = array<i32>} : memref<1x128xf32, #tpu.memory_space<vmem>>, vector<1x128xf32>,
    return
  }
  func.func @transform_0(%arg0: i32) -> (i32, i32) {
    %c0_i32 = arith.constant 0 : i32
    %c0_i32_0 = arith.constant 0 : i32
    return %arg0, %c0_i32 : i32, i32
  }
  func.func @transform_1(%arg0: i32) -> (i32, i32) {
    %c0_i32 = arith.constant 0 : i32
    %c0_i32_0 = arith.constant 0 : i32
    %c0_i32_1 = arith.constant 0 : i32
    return %c0_i32, %c0_i32_0 : i32, i32
  }
  func.func @transform_2(%arg0: i32) -> (i32, i32) {
    %c0_i32 = arith.constant 0 : i32
    %c0_i32_0 = arith.constant 0 : i32
    return %arg0, %c0_i32 : i32, i32
  }
  func.func @transform_3(%arg0: i32) -> (i32, i32) {
    %c0_i32 = arith.constant 0 : i32
    %c0_i32_0 = arith.constant 0 : i32
    %c0_i32_1 = arith.constant 0 : i32
    return %c0_i32, %c0_i32_0 : i32, i32
  }
  func.func @transform_4(%arg0: i32) -> (i32, i32) {
    %c0_i32 = arith.constant 0 : i32
    %c0_i32_0 = arith.constant 0 : i32
    %c0_i32_1 = arith.constant 0 : i32
    return %c0_i32, %c0_i32_0 : i32, i32
  }
}

</mosaic_0001>

<bundles_post_ra>
// kernel: tpu_custom_call.1
= control target key start
LH: loop header
LB: loop body
LE: loop exit
PB: predicated region body
PF: predicated region fallthrough
CT: control target
= control target key end

     0   :  { %10 = vsyncpa [#allocation3], 0  ;;  %s730_s0 = inlined_call_operand.hbm [shape: bf16[8,432], index: 0, kind: input, shape index: {}]   ;;  %s731_s1 = inlined_call_operand.hbm [shape: bf16[432,128], index: 1, kind: input, shape index: {}]   ;;  %s732_s2 = inlined_call_operand.hbm [shape: bf16[8,128], index: 2, kind: output, shape index: {0}]   ;;  %s733_s3 = inlined_call_operand.hbm [shape: f32[1,128], index: 3, kind: output, shape index: {1}]   ;;  %s734_s4 = inlined_call_operand.hbm [shape: f32[1,128], index: 4, kind: output, shape index: {2}]  }
   0x1   :  { %11 = vsyncpa [#allocation6], 0 }
   0x2   :  { %12 = vsyncpa [#allocation4], 0 }
   0x3   :  { %13 = vsyncpa [#allocation9], 0  ;;  %s19_s17 = sshll.u32 %s730_s0, 4  ;;  %s682_s18 = smov [#allocation2]   ;;  %s20_s17 = int_to_ptr.hbm [resolvable:$true] %s19_s17 }
   0x4   :  { %s21_s19 = sshll.u32 %s682_s18, 4  ;;  %s29_s22 = sshll.u32 %s731_s1, 4  ;;  %s22_s19 = int_to_ptr.vmem [resolvable:$true] %s21_s19  ;;  %s30_s22 = int_to_ptr.hbm [resolvable:$true] %s29_s22 }
   0x5   :  { %24 = dma.hbm_to_vmem [thread:$0]  %s20_s17, 256, %s22_s19, [#allocation3]  }
   0x6   :  { %s683_s23 = smov [#allocation5]   ;;  %s684_s25 = smov 64  }
   0x7   :  { %s31_s24 = sshll.u32 %s683_s23, 4  ;;  %s685_s26 = smov 4   ;;  %s32_s24 = int_to_ptr.vmem [resolvable:$true] %s31_s24 }
   0x8   :  { %37 = dma.hbm_to_vmem [thread:$0]  %s30_s22, 3456, %s32_s24, [#allocation6], %s684_s25, %s684_s25, %s685_s26  }
   0x9   :  { %674 = dma.done.wait [#allocation3], 256  }
   0xa   :  { %675 = vsyncadd [#allocation3], 4294967040 }
   0xb   :  { %676 = dma.done.wait [#allocation6], 3456  }
   0xc   :  { %677 = vsyncadd [#allocation6], 4294963840  ;;  %v526_v0 = vld [vmem:[#allocation5 + $0x38] sm:$0xff]  ;;  %v525_v3 = vld [vmem:[#allocation5 + $0x30] sm:$0xff]  ;;  %vm284_vm0 = vcmask 392192   ;;  %v686_v37 = vmov 0.0  }
   0xd   :  { %v534_v1 = vld [vmem:[#allocation5 + $0x78] sm:$0xff]  ;;  %288 = vmatpush.bf16.msra.mxu0 %v526_v0  ;;  %v533_v4 = vld [vmem:[#allocation5 + $0x70] sm:$0xff]  ;;  %v524_v7 = vld [vmem:[#allocation5 + $0x28] sm:$0xff]  ;;  %51 = vst [vmem:[#allocation8] sm:$0x1] %v686_v37  ;;  %s687_s0 = smov [#allocation7]  }
   0xe   :  { %v542_v2 = vld [vmem:[#allocation5 + $0xb8] sm:$0xff]  ;;  %301 = vmatpush.bf16.msra.mxu1 %v534_v1  ;;  %v541_v5 = vld [vmem:[#allocation5 + $0xb0] sm:$0xff]  ;;  %v532_v8 = vld [vmem:[#allocation5 + $0x68] sm:$0xff]  ;;  %52 = vst [vmem:[#allocation10] sm:$0x1] %v686_v37  ;;  %s366_s1 = sshll.u32 %s687_s0, 4  ;;  %s367_s1 = int_to_ptr.vmem [resolvable:$true] %s366_s1 }
   0xf   :  { %314 = vmatpush.bf16.msra.mxu2 %v542_v2  ;;  %v545_v6 = vld [vmem:[#allocation5 + $0xd0] sm:$0xff]  ;;  %v540_v9 = vld [vmem:[#allocation5 + $0xa8] sm:$0xff]  ;;  %v54_v11 = vld [vmem:[#allocation2 + $0x8] sm:$0xff]  ;;  %s368_s29 = sshll.u32 %s732_s2, 4  ;;  %s688_s30 = smov [#allocation8]   ;;  %s369_s29 = int_to_ptr.hbm [resolvable:$true] %s368_s29 }
  0x10   :  { %332 = vmatpush.bf16.msra.mxu3 %v545_v6  ;;  %v544_v10 = vld [vmem:[#allocation5 + $0xc8] sm:$0xff]  ;;  %v523_v12 = vld [vmem:[#allocation5 + $0x20] sm:$0xff]  ;;  %v114_v16 = vunpack.c.h.b16 %v54_v11  ;;  %v522_v17 = vld [vmem:[#allocation5 + $0x18] sm:$0xff]  ;;  %v113_v32 = vunpack.c.l.b16 %v54_v11  ;;  %s377_s2 = sshll.u32 %s688_s30, 4  ;;  %s379_s7 = sshll.u32 %s733_s3, 4  ;;  %s378_s2 = int_to_ptr.vmem [resolvable:$true] %s377_s2  ;;  %s380_s7 = int_to_ptr.hbm [resolvable:$true] %s379_s7 }
  0x11   :  { %289 = vmatpush.bf16.msra.mxu0 %v525_v3  ;;  %v531_v13 = vld [vmem:[#allocation5 + $0x60] sm:$0xff]  ;;  %v530_v18 = vld [vmem:[#allocation5 + $0x58] sm:$0xff]  ;;  %v521_v21 = vld [vmem:[#allocation5 + $0x10] sm:$0xff]  ;;  %s689_s8 = smov [#allocation10]   ;;  %s390_s12 = sshll.u32 %s734_s4, 4  ;;  %s391_s12 = int_to_ptr.hbm [resolvable:$true] %s390_s12 }
  0x12   :  { %302 = vmatpush.bf16.msra.mxu1 %v533_v4  ;;  %v539_v14 = vld [vmem:[#allocation5 + $0xa0] sm:$0xff]  ;;  %v538_v19 = vld [vmem:[#allocation5 + $0x98] sm:$0xff]  ;;  %v118_v20 = vpack.c.b16 %v114_v16, %v114_v16  ;;  %v529_v22 = vld [vmem:[#allocation5 + $0x50] sm:$0xff]  ;;  %v117_v36 = vpack.c.b16 %v113_v32, %v113_v32  ;;  %s388_s9 = sshll.u32 %s689_s8, 4  ;;  %s389_s9 = int_to_ptr.vmem [resolvable:$true] %s388_s9 }
  0x13   :  { %315 = vmatpush.bf16.msra.mxu2 %v541_v5  ;;  %v543_v15 = vld [vmem:[#allocation5 + $0xc0] sm:$0xff]  ;;  %v537_v23 = vld [vmem:[#allocation5 + $0x90] sm:$0xff]  ;;  %v520_v24 = vld [vmem:[#allocation5 + $0x8] sm:$0xff] }
  0x14   :  { %333 = vmatpush.bf16.msra.mxu3 %v544_v10  ;;  %v528_v25 = vld [vmem:[#allocation5 + $0x48] sm:$0xff]  ;;  %v53_v26 = vld [vmem:[#allocation2] sm:$0xff]  ;;  %v519_v30 = vld [vmem:[#allocation5] sm:$0xff] }
  0x15   :  { %290 = vmatpush.bf16.msra.mxu0 %v524_v7  ;;  %v536_v27 = vld [vmem:[#allocation5 + $0x88] sm:$0xff]  ;;  %v111_v28 = vunpack.c.l.b16 %v53_v26  ;;  %v112_v29 = vunpack.c.h.b16 %v53_v26  ;;  %v527_v31 = vld [vmem:[#allocation5 + $0x40] sm:$0xff]  ;;  %v342_v60 = vld [vmem:[#allocation8] sm:$0x1] }
  0x16   :  { %303 = vmatpush.bf16.msra.mxu1 %v532_v8  ;;  %v535_v33 = vld [vmem:[#allocation5 + $0x80] sm:$0xff]  ;;  %v351_v63 = vld [vmem:[#allocation10] sm:$0x1] }
  0x17   :  { %316 = vmatpush.bf16.msra.mxu2 %v540_v9  ;;  %v115_v34 = vpack.c.b16 %v111_v28, %v111_v28  ;;  %v116_v35 = vpack.c.b16 %v112_v29, %v112_v29 }
  0x18   :  { %334 = vmatpush.bf16.msra.mxu3 %v543_v15 }
  0x19   :  { %291 = vmatpush.bf16.msra.mxu0 %v523_v12 }
  0x1a   :  { %304 = vmatpush.bf16.msra.mxu1 %v531_v13 }
  0x1b   :  { %317 = vmatpush.bf16.msra.mxu2 %v539_v14  ;;  %518 = vmatmul.msk.bf16.vlgmr.msra.gmra.mxu3 %vm284_vm0, %v118_v20 }
  0x1d   :  { %292 = vmatpush.bf16.msra.mxu0 %v522_v17 }
  0x1e   :  { %305 = vmatpush.bf16.msra.mxu1 %v530_v18 }
  0x1f   :  { %318 = vmatpush.bf16.msra.mxu2 %v538_v19 }
  0x21   :  { %293 = vmatpush.bf16.msra.mxu0 %v521_v21 }
  0x22   :  { %306 = vmatpush.bf16.msra.mxu1 %v529_v22 }
  0x23   :  { %319 = vmatpush.bf16.msra.mxu2 %v537_v23 }
  0x25   :  { %294 = vmatpush.bf16.msra.mxu0 %v520_v24 }
  0x26   :  { %307 = vmatpush.bf16.msra.mxu1 %v528_v25 }
  0x27   :  { %320 = vmatpush.bf16.msra.mxu2 %v536_v27 }
  0x29   :  { %295 = vmatpush.bf16.msra.mxu0 %v519_v30 }
  0x2a   :  { %308 = vmatpush.bf16.msra.mxu1 %v527_v31 }
  0x2b   :  { %321 = vmatpush.bf16.msra.mxu2 %v535_v33 }
  0x2c   :  { %296 = vmatmul.bf16.vlgmr.msra.gmra.mxu0 %v115_v34 }
  0x2d   :  { %309 = vmatmul.bf16.vlgmr.msra.gmra.mxu1 %v116_v35 }
  0x2e   :  { %322 = vmatmul.bf16.vlgmr.msra.gmra.mxu2 %v117_v36 }
  0x9e   :  { %v336_v38 = vpop.f32.mrf.mxu3 }
  0xa6   :  { %v338_v41 = vpop.f32.mrf.mxu3 }
  0xa9   :  { %v297_v39 = vpop.f32.mrf.mxu0 }
  0xaa   :  { %v310_v40 = vpop.f32.mrf.mxu1 }
  0xab   :  { %v311_v42 = vadd.f32 %v310_v40, %v297_v39 }
  0xb1   :  { %v323_v43 = vpop.f32.mrf.mxu2  ;;  %v299_v45 = vpop.f32.mrf.mxu0 }
  0xb2   :  { %v324_v44 = vadd.f32 %v323_v43, %v311_v42  ;;  %v312_v46 = vpop.f32.mrf.mxu1 }
  0xb4   :  { %v337_v47 = vadd.f32 %v336_v38, %v324_v44 }
  0xb6   :  { %v343_v48 = vrot.slane %v337_v47, 4  ;;  %v352_v49 = vmul.f32 %v337_v47, %v337_v47  ;;  %v340_v50 = vpack.c.bf16 %v337_v47, %v337_v47 }
  0xb8   :  { %v344_v51 = vadd.f32 %v343_v48, %v337_v47  ;;  %v353_v52 = vrot.slane %v352_v49, 4  ;;  %341 = vst [vmem:[#allocation7] sm:$0xf] %v340_v50 }
  0xb9   :  { %v325_v53 = vpop.f32.mrf.mxu2  ;;  %371 = dma.vmem_to_hbm [thread:$0]  %s367_s1, 64, %s369_s29, [#allocation4]  }
  0xba   :  { %v345_v54 = vrot.slane %v344_v51, 2  ;;  %v354_v55 = vadd.f32 %v353_v52, %v352_v49 }
  0xbc   :  { %v355_v56 = vrot.slane %v354_v55, 2  ;;  %v346_v57 = vadd.f32 %v345_v54, %v344_v51 }
  0xbe   :  { %v356_v58 = vadd.f32 %v355_v56, %v354_v55  ;;  %v347_v59 = vrot.slane %v346_v57, 1 }
  0xc0   :  { %v348_v61 = vadd.f32 %v347_v59, %v346_v57  ;;  %v357_v62 = vrot.slane %v356_v58, 1 }
  0xc2   :  { %v349_v0 = vadd.f32 %v348_v61, %v342_v60  ;;  %v358_v1 = vadd.f32 %v357_v62, %v356_v58 }
  0xc4   :  { %350 = vst [vmem:[#allocation8] sm:$0x1] %v349_v0  ;;  %v359_v2 = vadd.f32 %v358_v1, %v351_v63 }
  0xc5   :  { %382 = dma.vmem_to_hbm [thread:$0]  %s378_s2, 16, %s380_s7, [#allocation9]  }
  0xc6   :  { %360 = vst [vmem:[#allocation10] sm:$0x1] %v359_v2 }
  0xc7   :  { %393 = dma.vmem_to_hbm [thread:$0]  %s389_s9, 16, %s391_s12, [#allocation9]  }
  0xc8   :  { %678 = dma.done.wait [#allocation4], 64  }
  0xc9   :  { %679 = vsyncadd [#allocation4], 4294967232 }
  0xca   :  { %680 = dma.done.wait [#allocation9], 32  }
  0xcb   :  { %681 = vsyncadd [#allocation9], 4294967264 }
  0xcc   :  { %406 = vsyncpa [#allocation3], 1 }
  0xcd   :  { %407 = vsyncpa [#allocation6], 1 }
  0xce   :  { %408 = vsyncpa [#allocation4], 1 }
  0xcf   :  { %409 = vsyncpa [#allocation9], 1 }

</bundles_post_ra>
